<compile_context>
chip_gen: v7x
topology: tpu7x:2x2x1
jax: 0.10.0
libtpu: 0.0.40
codegen_flags: <defaults>
</compile_context>

<pallas_src>
import functools

import jax
import jax.numpy as jnp
from jax.experimental import pallas as pl
from jax.experimental.pallas import tpu as pltpu

_BIG = 1.0e12


def _mce_kernel(yp_ref, yt_ref, out_ref, acc_ref, *, n_rows, row_tile,
                tiles_per_split):
    c = pl.program_id(0)          # core-split axis ("parallel")
    i = pl.program_id(1)          # row-tile axis ("arbitrary")

    @pl.when(i == 0)
    def _():
        acc_ref[...] = jnp.zeros_like(acc_ref)

    # In-kernel cast only: keep all math in f32 (v5e VPU/EUP have no bf16).
    yp = yp_ref[...].astype(jnp.float32)
    mask = yt_ref[...] != 0       # {0,1} multilabel indicator -> bool

    # Select-based masking (equivalent to the reference for binary y_true):
    #   neg: positives pushed to -1e12, negatives keep +y_pred
    #   pos: negatives pushed to -1e12, positives keep -y_pred
    neg = jnp.where(mask, -_BIG, yp)
    pos = jnp.where(mask, -yp, -_BIG)

    def lse_with_zero(x):
        # logsumexp over the last axis with an implicit appended 0 entry
        # (equivalent to torch.cat([x, zeros], -1) then logsumexp).
        m = jnp.maximum(jnp.max(x, axis=-1, keepdims=True), 0.0)
        s = jnp.sum(jnp.exp(x - m), axis=-1, keepdims=True) + jnp.exp(-m)
        return m + jnp.log(s)

    row_loss = lse_with_zero(neg) + lse_with_zero(pos)       # (row_tile, 1)

    # Mask rows that fall outside the real array (partial last tile, or a
    # duplicated clamped tile when the core split is uneven).
    tile_idx = c * tiles_per_split + i
    row_ids = tile_idx * row_tile + jax.lax.broadcasted_iota(
        jnp.int32, (row_tile, 1), 0)
    acc_ref[...] += jnp.where(row_ids < n_rows, row_loss, 0.0)

    @pl.when(i == pl.num_programs(1) - 1)
    def _():
        # Single cross-lane reduce + store per core (not per grid step).
        total = jnp.sum(acc_ref[...])
        out_ref[...] = jnp.full(out_ref.shape, total, dtype=out_ref.dtype)


def _round_up(x, m):
    return (x + m - 1) // m * m


def _pick_row_tile(n_rows, n_classes, bytes_per_elem_pair):
    # Size the tile so each grid step moves a few MiB (amortizes the ~0.35us
    # per-step overhead) while the double-buffered inputs stay well under the
    # scoped VMEM limit on every generation (v7x has only 64 MiB physical).
    TARGET_STEP_BYTES = 4 * 1024 * 1024     # both inputs, one pipeline buffer
    DOUBLE_BUF_BUDGET = 16 * 1024 * 1024    # both inputs, double-buffered
    bytes_per_row = max(1, n_classes * bytes_per_elem_pair)
    rows = min(TARGET_STEP_BYTES // bytes_per_row,
               DOUBLE_BUF_BUDGET // (2 * bytes_per_row))
    rows = min(rows, _round_up(n_rows, 8))
    return max(8, (rows // 8) * 8)


def multilabel_cross_entropy(y_pred, y_true, *, row_tile=None,
                             num_core_splits=2):
    """y_pred, y_true: (..., C). Returns a scalar f32 loss (mean over rows)."""
    C = y_pred.shape[-1]
    # Keep native dtypes in HBM (no wrapper-side f32 materialization).
    yp = y_pred.reshape(-1, C)
    yt = y_true.reshape(-1, C)
    N = yp.shape[0]

    if row_tile is None:
        row_tile = _pick_row_tile(N, C, yp.dtype.itemsize + yt.dtype.itemsize)
    row_tile = max(8, (int(row_tile) // 8) * 8)

    tiles_total = pl.cdiv(N, row_tile)
    num_splits = max(1, min(num_core_splits, tiles_total))
    tiles_per_split = pl.cdiv(tiles_total, num_splits)

    def in_index_map(c, i):
        # Clamp so duplicated tiles (uneven core split) stay in bounds; their
        # rows are masked out inside the kernel via the iota row mask.
        return (jnp.minimum(c * tiles_per_split + i, tiles_total - 1), 0)

    kernel = functools.partial(
        _mce_kernel, n_rows=N, row_tile=row_tile,
        tiles_per_split=tiles_per_split)

    # Per-core partial sums; (1, 8, 128) blocks keep the output layout-legal
    # and lane-dense.  Each core owns its own block (no accumulator race).
    partials = pl.pallas_call(
        kernel,
        out_shape=jax.ShapeDtypeStruct((num_splits, 8, 128), jnp.float32),
        grid_spec=pltpu.PrefetchScalarGridSpec(
            num_scalar_prefetch=0,
            grid=(num_splits, tiles_per_split),
            in_specs=[
                pl.BlockSpec((row_tile, C), in_index_map),
                pl.BlockSpec((row_tile, C), in_index_map),
            ],
            out_specs=pl.BlockSpec((1, 8, 128), lambda c, i: (c, 0, 0)),
            scratch_shapes=[pltpu.VMEM((row_tile, 1), jnp.float32)],
        ),
        compiler_params=pltpu.CompilerParams(
            dimension_semantics=("parallel", "arbitrary"),
            vmem_limit_bytes=32 * 1024 * 1024,
        ),
    )(yp, yt)

    return jnp.sum(partials[:, 0, 0]) / N


def _reference(y_pred, y_true):
    y_true = y_true.astype(jnp.float32)
    y_pred = (1.0 - 2.0 * y_true) * y_pred
    y_pred_neg = y_pred - y_true * 1.0e12
    y_pred_pos = y_pred - (1.0 - y_true) * 1.0e12
    zeros = jnp.zeros_like(y_pred[..., :1])
    y_pred_neg = jnp.concatenate([y_pred_neg, zeros], axis=-1)
    y_pred_pos = jnp.concatenate([y_pred_pos, zeros], axis=-1)
    neg_loss = jax.scipy.special.logsumexp(y_pred_neg, axis=-1)
    pos_loss = jax.scipy.special.logsumexp(y_pred_pos, axis=-1)
    return jnp.mean(neg_loss + pos_loss)


if __name__ == "__main__":
    key = jax.random.PRNGKey(0)
    k1, k2 = jax.random.split(key)
    B, S, C = 2, 8, 32  # batch=2, seq=8, num_labels=32
    y_pred = jax.random.normal(k1, (B, S, C), dtype=jnp.float32) * 3.0
    y_true = jax.random.bernoulli(k2, 0.3, (B, S, C)).astype(jnp.float32)

    loss = multilabel_cross_entropy(y_pred, y_true)
    loss = jax.block_until_ready(loss)

    ref = _reference(y_pred, y_true)
    assert jnp.allclose(loss, ref, rtol=1e-5, atol=1e-5), (loss, ref)
    print("KERNEL_OK")
</pallas_src>

<mosaic_0001>
module attributes {stable_mosaic.version = 11 : i64} {
  func.func @_mce_kernel(%arg0: i32, %arg1: i32, %arg2: memref<16x32xf32, #tpu.memory_space<vmem>>, %arg3: memref<16x32xf32, #tpu.memory_space<vmem>>, %arg4: memref<1x8x128xf32, #tpu.memory_space<vmem>>, %arg5: memref<16x1xf32, #tpu.memory_space<vmem>>) attributes {dimension_semantics = [#tpu.dimension_semantics<parallel>, #tpu.dimension_semantics<arbitrary>], iteration_bounds = array<i64: 1, 1>, scalar_prefetch = 0 : i64, scratch_operands = 1 : i64, tpu.core_type = #tpu.core_type<tc>, window_params = [{transform_indices = @transform_0, window_bounds = array<i64: 16, 32>}, {transform_indices = @transform_1, window_bounds = array<i64: 16, 32>}, {transform_indices = @transform_2, window_bounds = array<i64: 1, 8, 128>}]} {
    %c0_i32 = arith.constant 0 : i32
    %0 = arith.cmpi eq, %arg1, %c0_i32 : i32
    %1 = arith.extui %0 : i1 to i32
    %c0_i32_0 = arith.constant 0 : i32
    %2 = arith.cmpi ne, %1, %c0_i32_0 : i32
    scf.if %2 {
      %cst_23 = arith.constant 0.000000e+00 : f32
      %60 = vector.broadcast %cst_23 : f32 to vector<16x1xf32>
      %c0_24 = arith.constant 0 : index
      %c0_25 = arith.constant 0 : index
      %61 = vector.load %arg5[%c0_24, %c0_25] : memref<16x1xf32, #tpu.memory_space<vmem>>, vector<16x1xf32>
      tpu.vector_store %arg5[%c0_24, %c0_25], %60 {strides = array<i32>} : memref<16x1xf32, #tpu.memory_space<vmem>>, vector<16x1xf32>,
    } else {
    }
    %c0 = arith.constant 0 : index
    %c0_1 = arith.constant 0 : index
    %3 = vector.load %arg2[%c0, %c0_1] : memref<16x32xf32, #tpu.memory_space<vmem>>, vector<16x32xf32>
    %c0_2 = arith.constant 0 : index
    %c0_3 = arith.constant 0 : index
    %4 = vector.load %arg3[%c0_2, %c0_3] : memref<16x32xf32, #tpu.memory_space<vmem>>, vector<16x32xf32>
    %cst = arith.constant 0.000000e+00 : f32
    %5 = vector.broadcast %cst : f32 to vector<16x32xf32>
    %6 = arith.cmpf one, %4, %5 : vector<16x32xf32>
    %cst_4 = arith.constant -9.99999995E+11 : f32
    %7 = vector.broadcast %cst_4 : f32 to vector<16x32xf32>
    %8 = arith.select %6, %7, %3 : vector<16x32xi1>, vector<16x32xf32>
    %cst_5 = arith.constant 0.000000e+00 : f32
    %9 = vector.broadcast %cst_5 : f32 to vector<16x32xf32>
    %10 = arith.subf %9, %3 : vector<16x32xf32>
    %cst_6 = arith.constant -9.99999995E+11 : f32
    %11 = vector.broadcast %cst_6 : f32 to vector<16x32xf32>
    %12 = arith.select %6, %10, %11 : vector<16x32xi1>, vector<16x32xf32>
    %cst_7 = arith.constant dense<0xFF800000> : vector<16xf32>
    %13 = vector.multi_reduction <maximumf>, %8, %cst_7 [1] : vector<16x32xf32> to vector<16xf32>
    %14 = vector.shape_cast %13 : vector<16xf32> to vector<16x1xf32>
    %cst_8 = arith.constant 0.000000e+00 : f32
    %15 = vector.broadcast %cst_8 : f32 to vector<16x1xf32>
    %16 = arith.maximumf %14, %15 : vector<16x1xf32>
    %17 = vector.broadcast %16 : vector<16x1xf32> to vector<16x32xf32>
    %18 = arith.subf %8, %17 : vector<16x32xf32>
    %19 = math.exp %18 : vector<16x32xf32>
    %cst_9 = arith.constant dense<0.000000e+00> : vector<16xf32>
    %20 = vector.multi_reduction <add>, %19, %cst_9 [1] : vector<16x32xf32> to vector<16xf32>
    %21 = vector.shape_cast %20 : vector<16xf32> to vector<16x1xf32>
    %cst_10 = arith.constant 0.000000e+00 : f32
    %22 = vector.broadcast %cst_10 : f32 to vector<16x1xf32>
    %23 = arith.subf %22, %16 : vector<16x1xf32>
    %24 = math.exp %23 : vector<16x1xf32>
    %25 = arith.addf %21, %24 : vector<16x1xf32>
    %26 = math.log %25 : vector<16x1xf32>
    %27 = arith.addf %16, %26 : vector<16x1xf32>
    %cst_11 = arith.constant dense<0xFF800000> : vector<16xf32>
    %28 = vector.multi_reduction <maximumf>, %12, %cst_11 [1] : vector<16x32xf32> to vector<16xf32>
    %29 = vector.shape_cast %28 : vector<16xf32> to vector<16x1xf32>
    %cst_12 = arith.constant 0.000000e+00 : f32
    %30 = vector.broadcast %cst_12 : f32 to vector<16x1xf32>
    %31 = arith.maximumf %29, %30 : vector<16x1xf32>
    %32 = vector.broadcast %31 : vector<16x1xf32> to vector<16x32xf32>
    %33 = arith.subf %12, %32 : vector<16x32xf32>
    %34 = math.exp %33 : vector<16x32xf32>
    %cst_13 = arith.constant dense<0.000000e+00> : vector<16xf32>
    %35 = vector.multi_reduction <add>, %34, %cst_13 [1] : vector<16x32xf32> to vector<16xf32>
    %36 = vector.shape_cast %35 : vector<16xf32> to vector<16x1xf32>
    %cst_14 = arith.constant 0.000000e+00 : f32
    %37 = vector.broadcast %cst_14 : f32 to vector<16x1xf32>
    %38 = arith.subf %37, %31 : vector<16x1xf32>
    %39 = math.exp %38 : vector<16x1xf32>
    %40 = arith.addf %36, %39 : vector<16x1xf32>
    %41 = math.log %40 : vector<16x1xf32>
    %42 = arith.addf %31, %41 : vector<16x1xf32>
    %43 = arith.addf %27, %42 : vector<16x1xf32>
    %c1_i32 = arith.constant 1 : i32
    %44 = arith.muli %arg0, %c1_i32 : i32
    %45 = arith.addi %44, %arg1 : i32
    %c16_i32 = arith.constant 16 : i32
    %46 = arith.muli %45, %c16_i32 : i32
    %47 = tpu.iota {dimensions = array<i32: 0>} : vector<16x1xi32>
    %48 = vector.broadcast %46 : i32 to vector<16x1xi32>
    %49 = arith.addi %48, %47 : vector<16x1xi32>
    %c0_15 = arith.constant 0 : index
    %c0_16 = arith.constant 0 : index
    %50 = vector.load %arg5[%c0_15, %c0_16] : memref<16x1xf32, #tpu.memory_space<vmem>>, vector<16x1xf32>
    %c16_i32_17 = arith.constant 16 : i32
    %51 = vector.broadcast %c16_i32_17 : i32 to vector<16x1xi32>
    %52 = arith.cmpi slt, %49, %51 : vector<16x1xi32>
    %cst_18 = arith.constant 0.000000e+00 : f32
    %53 = vector.broadcast %cst_18 : f32 to vector<16x1xf32>
    %54 = arith.select %52, %43, %53 : vector<16x1xi1>, vector<16x1xf32>
    %55 = arith.addf %50, %54 : vector<16x1xf32>
    %c0_19 = arith.constant 0 : index
    %c0_20 = arith.constant 0 : index
    %56 = vector.load %arg5[%c0_19, %c0_20] : memref<16x1xf32, #tpu.memory_space<vmem>>, vector<16x1xf32>
    tpu.vector_store %arg5[%c0_19, %c0_20], %55 {strides = array<i32>} : memref<16x1xf32, #tpu.memory_space<vmem>>, vector<16x1xf32>,
    %c0_i32_21 = arith.constant 0 : i32
    %57 = arith.cmpi eq, %arg1, %c0_i32_21 : i32
    %58 = arith.extui %57 : i1 to i32
    %c0_i32_22 = arith.constant 0 : i32
    %59 = arith.cmpi ne, %58, %c0_i32_22 : i32
    scf.if %59 {
      %c0_23 = arith.constant 0 : index
      %c0_24 = arith.constant 0 : index
      %60 = vector.load %arg5[%c0_23, %c0_24] : memref<16x1xf32, #tpu.memory_space<vmem>>, vector<16x1xf32>
      %61 = vector.shape_cast %60 : vector<16x1xf32> to vector<1x16x1xf32>
      %cst_25 = arith.constant dense<0.000000e+00> : vector<1xf32>
      %62 = vector.multi_reduction <add>, %61, %cst_25 [1, 2] : vector<1x16x1xf32> to vector<1xf32>
      %63 = vector.shape_cast %62 : vector<1xf32> to vector<1x1x1xf32>
      %64 = vector.extract %63[0, 0, 0] : f32 from vector<1x1x1xf32>
      %65 = vector.broadcast %64 : f32 to vector<1x8x128xf32>
      %c0_26 = arith.constant 0 : index
      %c0_27 = arith.constant 0 : index
      %c0_28 = arith.constant 0 : index
      %66 = vector.load %arg4[%c0_26, %c0_27, %c0_28] : memref<1x8x128xf32, #tpu.memory_space<vmem>>, vector<1x8x128xf32>
      tpu.vector_store %arg4[%c0_26, %c0_27, %c0_28], %65 {strides = array<i32>} : memref<1x8x128xf32, #tpu.memory_space<vmem>>, vector<1x8x128xf32>,
    } else {
    }
    return
  }
  func.func @transform_0(%arg0: i32, %arg1: i32) -> (i32, i32) {
    %c1_i32 = arith.constant 1 : i32
    %0 = arith.muli %arg0, %c1_i32 : i32
    %1 = arith.addi %0, %arg1 : i32
    %c0_i32 = arith.constant 0 : i32
    %2 = arith.minsi %1, %c0_i32 : i32
    %c0_i32_0 = arith.constant 0 : i32
    %c0_i32_1 = arith.constant 0 : i32
    return %2, %c0_i32_0 : i32, i32
  }
  func.func @transform_1(%arg0: i32, %arg1: i32) -> (i32, i32) {
    %c1_i32 = arith.constant 1 : i32
    %0 = arith.muli %arg0, %c1_i32 : i32
    %1 = arith.addi %0, %arg1 : i32
    %c0_i32 = arith.constant 0 : i32
    %2 = arith.minsi %1, %c0_i32 : i32
    %c0_i32_0 = arith.constant 0 : i32
    %c0_i32_1 = arith.constant 0 : i32
    return %2, %c0_i32_0 : i32, i32
  }
  func.func @transform_2(%arg0: i32, %arg1: i32) -> (i32, i32, i32) {
    %c0_i32 = arith.constant 0 : i32
    %c0_i32_0 = arith.constant 0 : i32
    %c0_i32_1 = arith.constant 0 : i32
    return %arg0, %c0_i32, %c0_i32_0 : i32, i32, i32
  }
}

</mosaic_0001>

<bundles_post_ra>
// kernel: tpu_custom_call.1
= control target key start
LH: loop header
LB: loop body
LE: loop exit
PB: predicated region body
PF: predicated region fallthrough
CT: control target
= control target key end

     0   :  { %7 = vsyncpa [#allocation4], 0  ;;  %s403_s0 = inlined_call_operand.hbm [shape: f32[16,32], index: 0, kind: input, shape index: {}]   ;;  %s404_s1 = inlined_call_operand.hbm [shape: f32[16,32], index: 1, kind: input, shape index: {}]   ;;  %s405_s2 = inlined_call_operand.hbm [shape: f32[1,8,128], index: 2, kind: output, shape index: {}]  }
   0x1   :  { %8 = vsyncpa [#allocation7], 0 }
   0x2   :  { %9 = vsyncpa [#allocation5], 0  ;;  %s312_s9 = smov [#allocation3]   ;;  %s240_s13 = scalar_lea.hbm %s403_s0, 256 }
   0x3   :  { %s21_s10 = sshll.u32 %s312_s9, 4  ;;  %p241_p0 = scmp.ne.s32.totalorder %s403_s0, %s240_s13  ;;  %s22_s10 = int_to_ptr.vmem [resolvable:$true] %s21_s10 }
   0x4   :  { %p244_p1 = scmp.lt.u32.totalorder %s240_s13, %s403_s0 }
   0x6   :  { %p246_p2 = pnand %p244_p1, %p241_p0 }
   0x8   :  { %249 = shalt.err (!%p246_p2)
}
   0x9   :  { %s250_s18 = scalar_lea.vmem %s22_s10, 256  ;;  %p255_p4 = scmp.lt.s32.totalorder %s22_s10, %s22_s10 }
   0xa   :  { %p251_p3 = scmp.ne.s32.totalorder %s22_s10, %s250_s18  ;;  %p256_p5 = scmp.lt.s32.totalorder %s250_s18, %s250_s18 }
   0xc   :  { %p257_p6 = por %p256_p5, %p255_p4 }
   0xe   :  { %p258_p7 = pnand %p257_p6, %p251_p3 }
  0x10   :  { %261 = shalt.err (!%p258_p7)
}
  0x11   :  { %s313_s19 = smov 128   ;;  %s314_s20 = smov 8  }
  0x12   :  { %27 = dma.hbm_to_vmem [thread:$0]  %s403_s0, 256, %s22_s10, [#allocation4], %s313_s19, %s313_s19, %s314_s20  }
  0x13   :  { %s315_s23 = smov [#allocation6]   ;;  %s262_s27 = scalar_lea.hbm %s404_s1, 256 }
  0x14   :  { %s39_s24 = sshll.u32 %s315_s23, 4  ;;  %p263_p8 = scmp.ne.s32.totalorder %s404_s1, %s262_s27  ;;  %s40_s24 = int_to_ptr.vmem [resolvable:$true] %s39_s24 }
  0x15   :  { %p266_p9 = scmp.lt.u32.totalorder %s262_s27, %s404_s1 }
  0x17   :  { %p268_p10 = pnand %p266_p9, %p263_p8 }
  0x19   :  { %271 = shalt.err (!%p268_p10)
}
  0x1a   :  { %s272_s4 = scalar_lea.vmem %s40_s24, 256  ;;  %p277_p12 = scmp.lt.s32.totalorder %s40_s24, %s40_s24 }
  0x1b   :  { %p273_p11 = scmp.ne.s32.totalorder %s40_s24, %s272_s4  ;;  %p278_p13 = scmp.lt.s32.totalorder %s272_s4, %s272_s4 }
  0x1d   :  { %p279_p0 = por %p278_p13, %p277_p12 }
  0x1f   :  { %p280_p1 = pnand %p279_p0, %p273_p11 }
  0x21   :  { %283 = shalt.err (!%p280_p1)
}
  0x22   :  { %45 = dma.hbm_to_vmem [thread:$0]  %s404_s1, 256, %s40_s24, [#allocation7], %s313_s19, %s313_s19, %s314_s20  }
  0x23   :  { %306 = dma.done.wait [#allocation4], 256  }
  0x24   :  { %307 = vsyncadd [#allocation4], 4294967040 }
  0x25   :  { %308 = dma.done.wait [#allocation7], 256  }
  0x26   :  { %309 = vsyncadd [#allocation7], 4294967040  ;;  %v67_v0 = vld [vmem:[#allocation3] sm:$0xff]  ;;  %v69_v1 = vld [vmem:[#allocation6] sm:$0xff]  ;;  %vm79_vm0 = vcmask 261120   ;;  %vm64_vm3 = vcmask 7168  }
  0x27   :  { %v68_v2 = vld [vmem:[#allocation3 + $0x8] sm:$0xff]  ;;  %vm71_vm1 = vcmp.ne.f32.partialorder %v69_v1, 0.0  ;;  %v75_v3 = vsub.f32 0.0, %v67_v0  ;;  %v70_v4 = vld [vmem:[#allocation6 + $0x8] sm:$0xff]  ;;  %v316_v38 = vmov 0.0   ;;  %s317_s1 = smov [#allocation8]  }
  0x28   :  { %v76_v5 = vsub.f32 0.0, %v68_v2  ;;  %v73_v6 = vsel %vm71_vm1, -1e+12, %v67_v0  ;;  %vm72_vm2 = vcmp.ne.f32.partialorder %v70_v4, 0.0  ;;  %65 = vst.msk [vmem:[#allocation2] sm:$0xff] %vm64_vm3, %v316_v38  ;;  %66 = vst.msk [vmem:[#allocation2 + $0x8] sm:$0xff] %vm64_vm3, %v316_v38 }
  0x29   :  { %v80_v7 = vsel %vm79_vm0, %v73_v6, -inf  ;;  %v77_v8 = vsel %vm71_vm1, %v75_v3, -1e+12  ;;  %v74_v9 = vsel %vm72_vm2, -1e+12, %v68_v2  ;;  %s194_s6 = sshll.u32 %s317_s1, 4  ;;  %s195_s6 = int_to_ptr.vmem [resolvable:$true] %s194_s6 }
  0x2a   :  { %81 = vmax.xlane.f32.xlu0 %v80_v7  ;;  %v114_v10 = vsel %vm79_vm0, %v77_v8, -inf  ;;  %v78_v11 = vsel %vm72_vm2, %v76_v5, -1e+12  ;;  %v83_v12 = vsel %vm79_vm0, %v74_v9, -inf  ;;  %s284_s8 = scalar_lea.vmem %s195_s6, 128  ;;  %p289_p3 = scmp.lt.s32.totalorder %s195_s6, %s195_s6 }
  0x2b   :  { %115 = vmax.xlane.f32.xlu1 %v114_v10  ;;  %v117_v13 = vsel %vm79_vm0, %v78_v11, -inf  ;;  %p285_p2 = scmp.ne.s32.totalorder %s195_s6, %s284_s8  ;;  %p290_p4 = scmp.lt.s32.totalorder %s284_s8, %s284_s8 }
  0x2d   :  { %p291_p5 = por %p290_p4, %p289_p3 }
  0x2e   :  { %84 = vmax.xlane.f32.xlu0 %v83_v12 }
  0x2f   :  { %118 = vmax.xlane.f32.xlu1 %v117_v13  ;;  %v158_v4 = vld [vmem:[#allocation2] sm:$0xff]  ;;  %v159_v10 = vld [vmem:[#allocation2 + $0x8] sm:$0xff]  ;;  %p292_p6 = pnand %p291_p5, %p285_p2 }
  0xb7   :  { %v82_v14 = vpop.xlane.xlu0 %81 }
  0xb8   :  { %v361_v15 = vmax.f32 %v82_v14, 0.0  ;;  %v116_v16 = vpop.xlane.xlu1 %115 }
  0xb9   :  { %v363_v17 = vmax.f32 %v116_v16, 0.0 }
  0xba   :  { %v88_v18 = vsub.f32 %v73_v6, %v361_v15  ;;  %v100_v39 = vsub.f32 0.0, %v361_v15 }
  0xbb   :  { %v122_v19 = vsub.f32 %v77_v8, %v363_v17  ;;  %v85_v20 = vpop.xlane.xlu0 %84  ;;  %v134_v40 = vsub.f32 0.0, %v363_v17 }
  0xbc   :  { %v90_v21 = vmul.f32 1.442695, %v88_v18  ;;  %v367_v22 = vmax.f32 %v85_v20, 0.0  ;;  %v119_v23 = vpop.xlane.xlu1 %118  ;;  %v102_v41 = vmul.f32 1.442695, %v100_v39 }
  0xbd   :  { %v124_v24 = vmul.f32 1.442695, %v122_v19  ;;  %v369_v25 = vmax.f32 %v119_v23, 0.0  ;;  %v136_v43 = vmul.f32 1.442695, %v134_v40 }
  0xbe   :  { %216 = vpow2.f32 %v90_v21  ;;  %v89_v26 = vsub.f32 %v74_v9, %v367_v22  ;;  %v101_v42 = vsub.f32 0.0, %v367_v22 }
  0xbf   :  { %v123_v27 = vsub.f32 %v78_v11, %v369_v25  ;;  %218 = vpow2.f32 %v124_v24  ;;  %v135_v45 = vsub.f32 0.0, %v369_v25 }
  0xc0   :  { %v92_v28 = vmul.f32 1.442695, %v89_v26  ;;  %v104_v44 = vmul.f32 1.442695, %v101_v42 }
  0xc1   :  { %v126_v29 = vmul.f32 1.442695, %v123_v27  ;;  %v138_v46 = vmul.f32 1.442695, %v135_v45 }
  0xc2   :  { %220 = vpow2.f32 %v92_v28 }
  0xc3   :  { %222 = vpow2.f32 %v126_v29 }
  0xc4   :  { %224 = vpow2.f32 %v102_v41 }
  0xc5   :  { %226 = vpow2.f32 %v136_v43 }
  0xc6   :  { %228 = vpow2.f32 %v104_v44 }
  0xc7   :  { %230 = vpow2.f32 %v138_v46 }
  0xc8   :  { %v217_v30 = vpop.eup %216 }
  0xc9   :  { %v94_v31 = vsel %vm79_vm0, %v217_v30, 0.0  ;;  %v219_v32 = vpop.eup %218 }
  0xca   :  { %95 = vadd.xlane.f32.xlu0 %v94_v31  ;;  %v128_v33 = vsel %vm79_vm0, %v219_v32, 0.0 }
  0xcc   :  { %v221_v34 = vpop.eup %220 }
  0xcd   :  { %v97_v35 = vsel %vm79_vm0, %v221_v34, 0.0  ;;  %v223_v36 = vpop.eup %222 }
  0xce   :  { %129 = vadd.xlane.f32.xlu0 %v128_v33  ;;  %98 = vadd.xlane.f32.xlu1 %v97_v35  ;;  %v131_v37 = vsel %vm79_vm0, %v223_v36, 0.0  ;;  %v225_v47 = vpop.eup %224 }
  0xcf   :  { %v227_v50 = vpop.eup %226 }
  0xd0   :  { %v229_v51 = vpop.eup %228 }
  0xd1   :  { %v231_v56 = vpop.eup %230 }
  0xd2   :  { %132 = vadd.xlane.f32.xlu1 %v131_v37 }
 0x157   :  { %v96_v48 = vpop.xlane.xlu0 %95 }
 0x158   :  { %v106_v49 = vadd.f32 %v225_v47, %v96_v48 }
 0x15a   :  { %232 = vlog2.f32 %v106_v49 }
 0x15b   :  { %v99_v52 = vpop.xlane.xlu1 %98  ;;  %v130_v53 = vpop.xlane.xlu0 %129 }
 0x15c   :  { %v107_v54 = vadd.f32 %v229_v51, %v99_v52  ;;  %v140_v55 = vadd.f32 %v227_v50, %v130_v53 }
 0x15e   :  { %234 = vlog2.f32 %v107_v54 }
 0x15f   :  { %236 = vlog2.f32 %v140_v55  ;;  %v133_v57 = vpop.xlane.xlu1 %132 }
 0x160   :  { %v141_v58 = vadd.f32 %v231_v56, %v133_v57 }
 0x162   :  { %238 = vlog2.f32 %v141_v58 }
 0x164   :  { %v233_v59 = vpop.eup %232 }
 0x165   :  { %v109_v61 = vmul.f32 0.6931472, %v233_v59 }
 0x167   :  { %v112_v2 = vadd.f32 %v109_v61, %v361_v15 }
 0x168   :  { %v235_v60 = vpop.eup %234 }
 0x169   :  { %v237_v62 = vpop.eup %236  ;;  %v111_v0 = vmul.f32 0.6931472, %v235_v60 }
 0x16a   :  { %v143_v63 = vmul.f32 0.6931472, %v237_v62 }
 0x16b   :  { %v113_v7 = vadd.f32 %v111_v0, %v367_v22 }
 0x16c   :  { %v239_v1 = vpop.eup %238  ;;  %v146_v3 = vadd.f32 %v143_v63, %v363_v17 }
 0x16d   :  { %v145_v5 = vmul.f32 0.6931472, %v239_v1 }
 0x16e   :  { %v148_v6 = vadd.f32 %v146_v3, %v112_v2 }
 0x16f   :  { %v147_v8 = vadd.f32 %v145_v5, %v369_v25 }
 0x170   :  { %v164_v9 = vadd.f32 %v158_v4, %v148_v6 }
 0x171   :  { %v149_v11 = vadd.f32 %v147_v8, %v113_v7 }
 0x172   :  { %167 = vst.msk [vmem:[#allocation2] sm:$0xff] %vm64_vm3, %v164_v9 }
 0x173   :  { %v165_v12 = vadd.f32 %v159_v10, %v149_v11 }
 0x175   :  { %168 = vst.msk [vmem:[#allocation2 + $0x8] sm:$0xff] %vm64_vm3, %v165_v12 }
 0x179   :  { %v172_v13 = vld [vmem:[#allocation2] sm:$0xff] }
 0x17a   :  { %v174_v15 = vsel %vm64_vm3, %v172_v13, 0.0 }
 0x17c   :  { %v173_v14 = vld [vmem:[#allocation2 + $0x8] sm:$0xff] }
 0x17d   :  { %v175_v16 = vsel %vm64_vm3, %v173_v14, 0.0 }
 0x17e   :  { %v176_v17 = vadd.f32 %v175_v16, %v174_v15 }
 0x180   :  { %177 = vadd.xlane.f32.xlu0 %v176_v17 }
 0x20d   :  { %v178_v18 = vpop.xlane.xlu0 %177 }
 0x20e   :  { %v179_v19 = vrot.slane %v178_v18, 4 }
 0x210   :  { %v180_v20 = vadd.f32 %v179_v19, %v178_v18 }
 0x212   :  { %v181_v21 = vrot.slane %v180_v20, 2 }
 0x214   :  { %v182_v22 = vadd.f32 %v181_v21, %v180_v20 }
 0x216   :  { %v183_v23 = vrot.slane %v182_v22, 1 }
 0x218   :  { %v184_v24 = vadd.f32 %v183_v23, %v182_v22 }
 0x21a   :  { %208 = vpush %v184_v24 }
 0x24b   :  { %s209_s7 = spop %208 }
 0x24c   :  { %v186_v25 = vstv %s209_s7 }
 0x24d   :  { %187 = vst [vmem:[#allocation8] sm:$0xff] %v186_v25 }
 0x24e   :  { %295 = shalt.err (!%p292_p6)
}
 0x24f   :  { %s296_s11 = scalar_lea.hbm %s405_s2, 128 }
 0x250   :  { %p297_p7 = scmp.ne.s32.totalorder %s405_s2, %s296_s11  ;;  %p300_p8 = scmp.lt.u32.totalorder %s296_s11, %s405_s2 }
 0x252   :  { %p302_p9 = pnand %p300_p8, %p297_p7 }
 0x254   :  { %305 = shalt.err (!%p302_p9)
}
 0x255   :  { %197 = dma.vmem_to_hbm [thread:$0]  %s195_s6, 128, %s405_s2, [#allocation5]  }
 0x256   :  { %310 = dma.done.wait [#allocation5], 128  }
 0x257   :  { %311 = vsyncadd [#allocation5], 4294967168 }
 0x258   :  { %201 = vsyncpa [#allocation4], 1 }
 0x259   :  { %202 = vsyncpa [#allocation7], 1 }
 0x25a   :  { %203 = vsyncpa [#allocation5], 1 }

</bundles_post_ra>
